<compile_context>
chip_gen: v5e
topology: v5e:2x2
jax: 0.10.0
libtpu: 0.0.40
codegen_flags: <defaults>
</compile_context>

<pallas_src>
import functools

import jax
import jax.numpy as jnp
from jax.experimental import pallas as pl
from jax.experimental.pallas import tpu as pltpu


def _grn_kernel(x_ref, gb_ref, o_ref, *, g, C):
    # x_ref block: (1, R, g*C) native dtype; gb_ref: (2, g*C) f32 (gamma, beta).
    x = x_ref[0]                                                   # (R, gC)

    # Sum of squares over spatial rows, accumulated in f32 (no full f32 copy
    # of the slab is kept live past the reduction).
    ss = jnp.sum(jnp.square(x).astype(jnp.float32), axis=0, keepdims=True)  # (1, gC)

    # Fold the g spatial sub-groups packed into the lane dim into per-channel
    # sums: summing all g lane-rotations by multiples of C leaves every lane l
    # with the full channel sum for channel (l % C), replicated g times.
    ch = ss
    for j in range(1, g):
        ch = ch + pltpu.roll(ss, shift=j * C, axis=1)

    gx = jnp.sqrt(ch)                                              # (1, gC) = Gx per lane
    # Mean over lanes == mean over channels (each channel appears g times).
    mean_c = jnp.mean(gx, axis=-1, keepdims=True) + 1e-6           # (1, 1)
    nx = gx * pl.reciprocal(mean_c, approx=True)                   # (1, gC)

    gamma = gb_ref[0:1, :]                                         # (1, gC) f32
    beta = gb_ref[1:2, :]                                          # (1, gC) f32

    # Fused epilogue: gamma*(x*Nx) + beta + x  ==  x*(gamma*Nx + 1) + beta.
    scale = gamma * nx + 1.0                                       # (1, gC) f32
    out = x * scale.astype(x.dtype) + beta.astype(x.dtype)         # native dtype
    o_ref[0] = out


def grn_pallas(x_nhwc, gamma, beta):
    """x_nhwc: (N, H, W, C); gamma, beta: (1, 1, 1, C)."""
    N, H, W, C = x_nhwc.shape
    HW = H * W

    # Lane-folding factor: pack g spatial positions into the lane dim so the
    # minor dim is a full 128 lanes when C < 128.
    g = 1
    if C % 128 != 0 and 128 % C == 0 and HW % (128 // C) == 0:
        g = 128 // C
    R = HW // g
    gC = g * C

    # Row-major NHWC -> (N, HW/g, g*C): lane l encodes (spatial sub-index j,
    # channel c) with l = j*C + c, so channel = l % C.
    x_k = x_nhwc.reshape(N, R, gC)

    # Pre-tile gamma/beta to lane width and pack into one (2, g*C) f32 operand.
    gamma_t = jnp.tile(gamma.reshape(1, C).astype(jnp.float32), (1, g))
    beta_t = jnp.tile(beta.reshape(1, C).astype(jnp.float32), (1, g))
    gb = jnp.concatenate([gamma_t, beta_t], axis=0)                # (2, gC)

    # Size the scoped VMEM limit from the slab (in+out double-buffered plus
    # in-kernel f32 temporaries), clamped to stay within every chip's VMEM.
    itemsize = jnp.dtype(x_nhwc.dtype).itemsize
    slab_bytes = R * gC * itemsize
    want = 4 * slab_bytes + 2 * R * gC * 4 + (2 << 20)
    vmem_limit = int(min(max(32 << 20, want), 64 << 20))

    kernel = functools.partial(_grn_kernel, g=g, C=C)

    out = pl.pallas_call(
        kernel,
        out_shape=jax.ShapeDtypeStruct((N, R, gC), x_nhwc.dtype),
        grid_spec=pltpu.PrefetchScalarGridSpec(
            num_scalar_prefetch=0,
            grid=(N,),
            in_specs=[
                pl.BlockSpec((1, R, gC), lambda i: (i, 0, 0)),
                pl.BlockSpec((2, gC), lambda i: (0, 0)),
            ],
            out_specs=pl.BlockSpec((1, R, gC), lambda i: (i, 0, 0)),
        ),
        input_output_aliases={0: 0},  # output reuses x's HBM buffer
        compiler_params=pltpu.CompilerParams(
            dimension_semantics=("parallel",),
            vmem_limit_bytes=vmem_limit,
        ),
    )(x_k, gb)
    return out.reshape(N, H, W, C)


def grn_reference(x, gamma, beta):
    """Pure-JAX reference matching the PyTorch GRN forward (f32 math)."""
    xf = x.astype(jnp.float32)
    gx = jnp.sqrt(jnp.sum(xf * xf, axis=(1, 2), keepdims=True))
    nx = gx / (jnp.mean(gx, axis=-1, keepdims=True) + 1e-6)
    gf = gamma.astype(jnp.float32)
    bf = beta.astype(jnp.float32)
    return (gf * (xf * nx) + bf + xf).astype(x.dtype)


if __name__ == "__main__":
    key = jax.random.PRNGKey(0)
    kx, kg, kb = jax.random.split(key, 3)

    N, H, W, C = 2, 8, 8, 32
    x = jax.random.normal(kx, (N, H, W, C), dtype=jnp.float32)
    # Module __init__ uses zeros for gamma/beta; use small deterministic random
    # values so the kernel's math path is actually exercised.
    gamma = 0.1 * jax.random.normal(kg, (1, 1, 1, C), dtype=jnp.float32)
    beta = 0.1 * jax.random.normal(kb, (1, 1, 1, C), dtype=jnp.float32)

    y = jax.jit(grn_pallas)(x, gamma, beta)
    jax.block_until_ready(y)

    y_ref = grn_reference(x, gamma, beta)
    # Tolerance loosened slightly for the EUP approximate reciprocal and the
    # fused-epilogue reassociation (both well below 1e-3 relative here).
    assert jnp.allclose(y, y_ref, atol=2e-3, rtol=2e-3), "mismatch vs reference"

    print("KERNEL_OK")
</pallas_src>

<mosaic_0001>
module attributes {stable_mosaic.version = 11 : i64} {
  func.func @_grn_kernel(%arg0: i32, %arg1: memref<1x16x128xf32, #tpu.memory_space<vmem>>, %arg2: memref<2x128xf32, #tpu.memory_space<vmem>>, %arg3: memref<1x16x128xf32, #tpu.memory_space<vmem>>) attributes {dimension_semantics = [#tpu.dimension_semantics<parallel>], iteration_bounds = array<i64: 2>, scalar_prefetch = 0 : i64, scratch_operands = 0 : i64, tpu.core_type = #tpu.core_type<tc>, window_params = [{transform_indices = @transform_0, window_bounds = array<i64: 1, 16, 128>}, {pipeline_mode = #tpu.pipeline_mode<synchronous>, transform_indices = @transform_1, window_bounds = array<i64: 2, 128>}, {transform_indices = @transform_2, window_bounds = array<i64: 1, 16, 128>}]} {
    %c0 = arith.constant 0 : index
    %c0_0 = arith.constant 0 : index
    %c0_1 = arith.constant 0 : index
    %0 = vector.load %arg1[%c0, %c0_0, %c0_1] : memref<1x16x128xf32, #tpu.memory_space<vmem>>, vector<1x16x128xf32>
    %1 = vector.shape_cast %0 : vector<1x16x128xf32> to vector<16x128xf32>
    %2 = arith.mulf %1, %1 : vector<16x128xf32>
    %cst = arith.constant dense<0.000000e+00> : vector<128xf32>
    %3 = vector.multi_reduction <add>, %2, %cst [0] : vector<16x128xf32> to vector<128xf32>
    %4 = vector.shape_cast %3 : vector<128xf32> to vector<1x128xf32>
    %c32_i32 = arith.constant 32 : i32
    %5 = tpu.dynamic_rotate %4 by %c32_i32 dim 1 : vector<1x128xf32>, i32 -> vector<1x128xf32>
    %6 = arith.addf %4, %5 : vector<1x128xf32>
    %c64_i32 = arith.constant 64 : i32
    %7 = tpu.dynamic_rotate %4 by %c64_i32 dim 1 : vector<1x128xf32>, i32 -> vector<1x128xf32>
    %8 = arith.addf %6, %7 : vector<1x128xf32>
    %c96_i32 = arith.constant 96 : i32
    %9 = tpu.dynamic_rotate %4 by %c96_i32 dim 1 : vector<1x128xf32>, i32 -> vector<1x128xf32>
    %10 = arith.addf %8, %9 : vector<1x128xf32>
    %11 = math.sqrt %10 : vector<1x128xf32>
    %cst_2 = arith.constant dense<0.000000e+00> : vector<1xf32>
    %12 = vector.multi_reduction <add>, %11, %cst_2 [1] : vector<1x128xf32> to vector<1xf32>
    %13 = vector.shape_cast %12 : vector<1xf32> to vector<1x1xf32>
    %cst_3 = arith.constant 1.280000e+02 : f32
    %14 = vector.broadcast %cst_3 : f32 to vector<1x1xf32>
    %15 = arith.divf %13, %14 : vector<1x1xf32>
    %cst_4 = arith.constant 9.99999997E-7 : f32
    %16 = vector.broadcast %cst_4 : f32 to vector<1x1xf32>
    %17 = arith.addf %15, %16 : vector<1x1xf32>
    %18 = tpu.reciprocal %17 {approx = true} : vector<1x1xf32> -> vector<1x1xf32>
    %19 = vector.broadcast %18 : vector<1x1xf32> to vector<1x128xf32>
    %20 = arith.mulf %11, %19 : vector<1x128xf32>
    %c0_5 = arith.constant 0 : index
    %c0_6 = arith.constant 0 : index
    %21 = vector.load %arg2[%c0_5, %c0_6] : memref<2x128xf32, #tpu.memory_space<vmem>>, vector<1x128xf32>
    %c1 = arith.constant 1 : index
    %c0_7 = arith.constant 0 : index
    %22 = vector.load %arg2[%c1, %c0_7] : memref<2x128xf32, #tpu.memory_space<vmem>>, vector<1x128xf32>
    %23 = arith.mulf %21, %20 : vector<1x128xf32>
    %cst_8 = arith.constant 1.000000e+00 : f32
    %24 = vector.broadcast %cst_8 : f32 to vector<1x128xf32>
    %25 = arith.addf %23, %24 : vector<1x128xf32>
    %26 = vector.broadcast %25 : vector<1x128xf32> to vector<16x128xf32>
    %27 = arith.mulf %1, %26 : vector<16x128xf32>
    %28 = vector.broadcast %22 : vector<1x128xf32> to vector<16x128xf32>
    %29 = arith.addf %27, %28 : vector<16x128xf32>
    %c0_9 = arith.constant 0 : index
    %c0_10 = arith.constant 0 : index
    %c0_11 = arith.constant 0 : index
    %30 = vector.load %arg3[%c0_9, %c0_10, %c0_11] : memref<1x16x128xf32, #tpu.memory_space<vmem>>, vector<1x16x128xf32>
    %31 = vector.shape_cast %30 : vector<1x16x128xf32> to vector<16x128xf32>
    %32 = vector.shape_cast %29 : vector<16x128xf32> to vector<1x16x128xf32>
    tpu.vector_store %arg3[%c0_9, %c0_10, %c0_11], %32 {strides = array<i32>} : memref<1x16x128xf32, #tpu.memory_space<vmem>>, vector<1x16x128xf32>,
    return
  }
  func.func @transform_0(%arg0: i32) -> (i32, i32, i32) {
    %c0_i32 = arith.constant 0 : i32
    %c0_i32_0 = arith.constant 0 : i32
    %c0_i32_1 = arith.constant 0 : i32
    return %arg0, %c0_i32, %c0_i32_0 : i32, i32, i32
  }
  func.func @transform_1(%arg0: i32) -> (i32, i32) {
    %c0_i32 = arith.constant 0 : i32
    %c0_i32_0 = arith.constant 0 : i32
    %c0_i32_1 = arith.constant 0 : i32
    return %c0_i32, %c0_i32_0 : i32, i32
  }
  func.func @transform_2(%arg0: i32) -> (i32, i32, i32) {
    %c0_i32 = arith.constant 0 : i32
    %c0_i32_0 = arith.constant 0 : i32
    %c0_i32_1 = arith.constant 0 : i32
    return %arg0, %c0_i32, %c0_i32_0 : i32, i32, i32
  }
}

</mosaic_0001>

<bundles_post_ra>
// kernel: grn_pallas.1
= control target key start
LH: loop header
LB: loop body
LE: loop exit
PB: predicated region body
PF: predicated region fallthrough
CT: control target
= control target key end

     0   :  { %s317_s9 = smov 0   ;;  %s347_s0 = inlined_call_operand.vmem [shape: f32[2,16,128], index: 0, kind: input, shape index: {}, may-alias: {0,2}]   ;;  %s348_s1 = inlined_call_operand.vmem [shape: f32[2,128], index: 1, kind: input, shape index: {}]   ;;  %s349_s2 = inlined_call_operand.vmem [shape: f32[2,16,128], index: 2, kind: output, shape index: {}, may-alias: {0,2}]  }
   0x1 LB: > { %s258_s10 = sadd.s32 4294967295, %s296_s9   ;;  %p262_p0 = scmp.ge.s32.totalorder %s296_s9, 1  ;;  %s296_s9 = sphi %s317_s9, %s12_s9  }
   0x2   : > { %p112_p1 = scmp.lt.s32.totalorder %s296_s9, 3 }
   0x4   : > { %p113_p2 = pnand %p262_p0, %p112_p1 }
   0x5   : > { %p134_p3 = scmp.lt.s32.totalorder (!%p113_p2), %s258_s10, 1  ;;  %s298_s15 = smov (!%p113_p2), 32  }
   0x6   : > { %116 = sbr.rel (%p113_p2) target bundleno = 321 (0x141), region = 28  ;;  %s299_s16 = smov (!%p113_p2), 96  }
   0x7   : > { %s300_s17 = smov (!%p113_p2), 64  }
   0xb   : > { %s351_s10 = smov (!%p134_p3, %s258_s10), 1  ;;  %vm176_vm1 = vcmask 1040384   ;;  %v301_v28 = vmov 128.0   ;;  %v191_v39 = vld [vmem:[%s348_s1] sm:$0x1] }
   0xc   : > { %s269_s11 = sshll.u32 %s351_s10, 4  ;;  %v283_v43 = vld [vmem:[%s348_s1 + $0x1] ss:$0 sm:$0xff] }
   0xd   : > { %s138_s14 = scalar_lea.vmem %s347_s0, %s269_s11  ;;  %s143_s24 = scalar_lea.vmem %s349_s2, %s269_s11 }
   0xe   : > { %v144_v0 = vld [vmem:[%s138_s14] sm:$0xff]  ;;  %v145_v1 = vld [vmem:[%s138_s14 + $0x8] sm:$0xff] }
   0xf   : > { %v146_v2 = vmul.f32 %v144_v0, %v144_v0  ;;  %v147_v3 = vmul.f32 %v145_v1, %v145_v1 }
  0x11   : > { %v148_v4 = vadd.f32 %v147_v3, %v146_v2 }
  0x13   : > { %v149_v5 = vrot.slane %v148_v4, 4 }
  0x15   : > { %v150_v6 = vadd.f32 %v149_v5, %v148_v4 }
  0x17   : > { %v151_v7 = vrot.slane %v150_v6, 2 }
  0x19   : > { %v152_v8 = vadd.f32 %v151_v7, %v150_v6 }
  0x1b   : > { %v153_v9 = vrot.slane %v152_v8, 1 }
  0x1d   : > { %v154_v10 = vadd.f32 %v153_v9, %v152_v8 }
  0x1f   : > { %155 = vrot.lane.b32.xlu0 %v154_v10, %s298_s15  ;;  %161 = vrot.lane.b32.xlu1 %v154_v10, %s299_s16 }
  0x27   : > { %158 = vrot.lane.b32.xlu0 %v154_v10, %s300_s17 }
  0x91   : > { %v156_v11 = vpop.permute.xlu0 %155  ;;  %v162_v14 = vpop.permute.xlu1 %161 }
  0x92   : > { %v157_v12 = vadd.f32 %v156_v11, %v154_v10 }
  0x99   : > { %v159_v13 = vpop.permute.xlu0 %158 }
  0x9a   : > { %v160_v15 = vadd.f32 %v159_v13, %v157_v12 }
  0x9c   : > { %v163_v16 = vadd.f32 %v162_v14, %v160_v15 }
  0x9e   : > { %284 = vrsqrt.f32 %v163_v16  ;;  %vm171_vm0 = vcmp.eq.f32.partialorder %v163_v16, inf  ;;  %v174_v24 = vand.u32 2147483648, %v163_v16  ;;  %vm173_vm2 = vcmp.eq.f32.partialorder %v163_v16, 0.0 }
  0x9f   : > { %286 = vrcp.f32 %v301_v28 }
  0xa4   : > { %v285_v17 = vpop.eup %284 }
  0xa5   : > { %v165_v18 = vmul.f32 %v285_v17, %v163_v16  ;;  %v287_v29 = vpop.eup %286 }
  0xa6   : > { %v181_v30 = vmul.f32 128.0, %v287_v29  ;;  %vm185_vm3 = vweird.f32 %v287_v29 }
  0xa7   : > { %v166_v19 = vmul.f32 %v285_v17, %v165_v18 }
  0xa8   : > { %v182_v31 = vsub.f32 1.0, %v181_v30 }
  0xa9   : > { %v167_v20 = vmul.f32 0.5, %v166_v19 }
  0xaa   : > { %v183_v32 = vmul.f32 %v287_v29, %v182_v31 }
  0xab   : > { %v168_v21 = vsub.f32 1.5, %v167_v20 }
  0xac   : > { %v184_v33 = vadd.f32 %v287_v29, %v183_v32 }
  0xad   : > { %v169_v22 = vmul.f32 %v285_v17, %v168_v21 }
  0xae   : > { %v186_v34 = vsel %vm185_vm3, %v287_v29, %v184_v33 }
  0xaf   : > { %v170_v23 = vmul.f32 %v169_v22, %v163_v16 }
  0xb1   : > { %v172_v25 = vsel %vm171_vm0, %v163_v16, %v170_v23 }
  0xb2   : > { %v175_v26 = vsel %vm173_vm2, %v174_v24, %v172_v25 }
  0xb3   : > { %v177_v27 = vsel %vm176_vm1, %v175_v26, 0.0 }
  0xb4   : > { %178 = vadd.xlane.f32.xlu1 %v177_v27 }
 0x127   : > { %v179_v35 = vpop.xlane.xlu1 %178 }
 0x128   : > { %v187_v36 = vmul.f32 %v186_v34, %v179_v35 }
 0x12a   : > { %v188_v37 = vadd.f32 1e-06, %v187_v36 }
 0x12c   : > { %288 = vrcp.f32 %v188_v37 }
 0x132   : > { %v289_v38 = vpop.eup %288 }
 0x133   : > { %v190_v40 = vmul.f32 %v289_v38, %v175_v26 }
 0x135   : > { %v193_v41 = vmul.f32 %v191_v39, %v190_v40 }
 0x137   : > { %v194_v42 = vadd.f32 1.0, %v193_v41 }
 0x139   : > { %v195_v44 = vperm.slane %v194_v42, 0 }
 0x13b   : > { %v196_v45 = vmul.f32 %v195_v44, %v144_v0  ;;  %v197_v46 = vmul.f32 %v195_v44, %v145_v1 }
 0x13d   : > { %v199_v47 = vadd.f32 %v283_v43, %v196_v45  ;;  %v200_v48 = vadd.f32 %v283_v43, %v197_v46 }
 0x13f   : > { %201 = vst [vmem:[%s143_s24] sm:$0xff] %v199_v47 }
 0x140   : > { %202 = vst [vmem:[%s143_s24 + $0x8] sm:$0xff] %v200_v48 }
 0x141 PF: > { %s12_s9 = sadd.s32 1, %s296_s9  }
 0x142   : > { %p9_p4 = scmp.ge.s32.totalorder %s12_s9, 4  }
 0x144   :  { %11 = sbr.rel (!%p9_p4) target bundleno = 1 (0x1), region = 58 }

</bundles_post_ra>
